<compile_context>
chip_gen: v7x
topology: tpu7x:2x2x1
jax: 0.10.0
libtpu: 0.0.40
codegen_flags: <defaults>
</compile_context>

<pallas_src>
import jax
import jax.numpy as jnp
from jax.experimental import pallas as pl
from jax.experimental.pallas import tpu as pltpu

EPS = 1e-5  # PyTorch BatchNorm1d default


def feature_encoder_kernel(x_ref,
                           w1_ref, s1_ref,
                           w2_ref, s2_ref,
                           w3_ref, s3_ref,
                           o_ref):
    # Layer 1: (folded) Linear -> ReLU
    h = jnp.dot(x_ref[...], w1_ref[...], preferred_element_type=jnp.float32)
    h = jnp.maximum(h + s1_ref[...], 0.0).astype(w2_ref.dtype)  # no-op cast when f32
    # Layer 2
    h = jnp.dot(h, w2_ref[...], preferred_element_type=jnp.float32)
    h = jnp.maximum(h + s2_ref[...], 0.0).astype(w3_ref.dtype)
    # Layer 3
    h = jnp.dot(h, w3_ref[...], preferred_element_type=jnp.float32)
    h = jnp.maximum(h + s3_ref[...], 0.0)
    o_ref[...] = h.astype(o_ref.dtype)


def _round_up(x, m):
    return ((x + m - 1) // m) * m


def _fold_layer(params, li, compute_dtype):
    """Fold BN(eval) + bias into the (in, out) weight. Returns (W', shift)."""
    scale = params[f"g{li}"] * jax.lax.rsqrt(params[f"v{li}"] + EPS)          # (1, H)
    w = (params[f"w{li}"] * scale).astype(compute_dtype)                       # (in, H)
    shift = ((params[f"b{li}"] - params[f"m{li}"]) * scale + params[f"be{li}"]
             ).astype(jnp.float32)                                             # (1, H)
    return w, shift


def feature_encoder(x, params, *, tile_m=256, compute_dtype=jnp.float32):
    """x: (N, F) float32. params: dict of pre-transposed (in, out) weights + BN stats."""
    N, F = x.shape
    H = params["w1"].shape[1]

    # ---- host-side folding of BN + bias into weights -------------------------------
    flat_params = []
    for li in (1, 2, 3):
        w, s = _fold_layer(params, li, compute_dtype)
        flat_params += [w, s]

    # ---- tile sizing: multiples of 8 sublanes, pad batch, prefer >= 2 grid steps ----
    tile_m = max(8, _round_up(min(tile_m, max(N, 1)), 8))
    n_pad = _round_up(N, 8)
    if n_pad // tile_m < 2 and tile_m > 8:            # keep v7x megacore busy if possible
        tile_m = max(8, _round_up(n_pad // 2, 8))
    n_pad = _round_up(N, tile_m)
    x_in = x.astype(compute_dtype)
    if n_pad != N:
        x_in = jnp.pad(x_in, ((0, n_pad - N), (0, 0)))

    grid = (n_pad // tile_m,)

    def row_spec(cols):
        return pl.BlockSpec((tile_m, cols), lambda i: (i, 0))

    def full_spec(shape):
        return pl.BlockSpec(shape, lambda i: tuple(0 for _ in shape))

    in_specs = [row_spec(F)] + [full_spec(p.shape) for p in flat_params]

    out = pl.pallas_call(
        feature_encoder_kernel,
        out_shape=jax.ShapeDtypeStruct((n_pad, H), x.dtype),
        grid_spec=pltpu.PrefetchScalarGridSpec(
            num_scalar_prefetch=0,
            grid=grid,
            in_specs=in_specs,
            out_specs=row_spec(H),
        ),
        compiler_params=pltpu.CompilerParams(
            dimension_semantics=("parallel",),
        ),
    )(x_in, *flat_params)

    if n_pad != N:
        out = out[:N]
    return out


def init_params(key, feat_dim, hidden):
    """Deterministic synthetic parameters matching the PyTorch module shapes."""
    ks = jax.random.split(key, 18)
    p = {}
    dims_in = [feat_dim, hidden, hidden]
    for li in range(3):
        kw, kb, kg, kbe, km, kv = ks[6 * li: 6 * li + 6]
        d_in = dims_in[li]
        # PyTorch Linear stores weight as (out, in); we keep the transposed (in, out).
        p[f"w{li + 1}"] = jax.random.normal(kw, (d_in, hidden), jnp.float32) * 0.05
        p[f"b{li + 1}"] = jax.random.normal(kb, (1, hidden), jnp.float32) * 0.05
        # BatchNorm affine params + running stats (independent keys now).
        p[f"g{li + 1}"] = 1.0 + 0.1 * jax.random.normal(kg, (1, hidden), jnp.float32)
        p[f"be{li + 1}"] = 0.1 * jax.random.normal(kbe, (1, hidden), jnp.float32)
        p[f"m{li + 1}"] = 0.05 * jax.random.normal(km, (1, hidden), jnp.float32)
        p[f"v{li + 1}"] = 1.0 + 0.1 * jax.random.uniform(kv, (1, hidden), jnp.float32)
    return p


def feature_encoder_ref(x, p):
    """Unfolded eval-mode reference: Linear -> BN(eval) -> ReLU, x3."""
    h = x
    for li in (1, 2, 3):
        h = h @ p[f"w{li}"] + p[f"b{li}"]
        h = (h - p[f"m{li}"]) * jax.lax.rsqrt(p[f"v{li}"] + EPS) * p[f"g{li}"] + p[f"be{li}"]
        h = jnp.maximum(h, 0.0)
    return h


if __name__ == "__main__":
    key = jax.random.PRNGKey(0)
    k_x, k_p = jax.random.split(key)

    # Small but representative shapes: feat_dim=80 (module default), hidden=128 so the
    # output / intermediates are lane-dense; 1024 rows -> 4 grid steps at tile_m=256.
    N, FEAT, HID = 1024, 80, 128
    x = jax.random.normal(k_x, (N, FEAT), jnp.float32)
    params = init_params(k_p, FEAT, HID)

    out = feature_encoder(x, params, tile_m=256)
    out = jax.block_until_ready(out)

    ref = feature_encoder_ref(x, params)
    assert out.shape == (N, HID)
    assert jnp.allclose(out, ref, atol=1e-4, rtol=1e-4), "mismatch vs reference"

    print("KERNEL_OK")
</pallas_src>

<mosaic_0001>
module attributes {stable_mosaic.version = 11 : i64} {
  func.func @feature_encoder_kernel(%arg0: i32, %arg1: memref<256x80xf32, #tpu.memory_space<vmem>>, %arg2: memref<80x128xf32, #tpu.memory_space<vmem>>, %arg3: memref<1x128xf32, #tpu.memory_space<vmem>>, %arg4: memref<128x128xf32, #tpu.memory_space<vmem>>, %arg5: memref<1x128xf32, #tpu.memory_space<vmem>>, %arg6: memref<128x128xf32, #tpu.memory_space<vmem>>, %arg7: memref<1x128xf32, #tpu.memory_space<vmem>>, %arg8: memref<256x128xf32, #tpu.memory_space<vmem>>) attributes {dimension_semantics = [#tpu.dimension_semantics<parallel>], iteration_bounds = array<i64: 4>, scalar_prefetch = 0 : i64, scratch_operands = 0 : i64, tpu.core_type = #tpu.core_type<tc>, window_params = [{transform_indices = @transform_0, window_bounds = array<i64: 256, 80>}, {pipeline_mode = #tpu.pipeline_mode<synchronous>, transform_indices = @transform_1, window_bounds = array<i64: 80, 128>}, {pipeline_mode = #tpu.pipeline_mode<synchronous>, transform_indices = @transform_2, window_bounds = array<i64: 1, 128>}, {pipeline_mode = #tpu.pipeline_mode<synchronous>, transform_indices = @transform_3, window_bounds = array<i64: 128, 128>}, {pipeline_mode = #tpu.pipeline_mode<synchronous>, transform_indices = @transform_4, window_bounds = array<i64: 1, 128>}, {pipeline_mode = #tpu.pipeline_mode<synchronous>, transform_indices = @transform_5, window_bounds = array<i64: 128, 128>}, {pipeline_mode = #tpu.pipeline_mode<synchronous>, transform_indices = @transform_6, window_bounds = array<i64: 1, 128>}, {transform_indices = @transform_7, window_bounds = array<i64: 256, 128>}]} {
    %c0 = arith.constant 0 : index
    %c0_0 = arith.constant 0 : index
    %0 = vector.load %arg1[%c0, %c0_0] : memref<256x80xf32, #tpu.memory_space<vmem>>, vector<256x80xf32>
    %c0_1 = arith.constant 0 : index
    %c0_2 = arith.constant 0 : index
    %1 = vector.load %arg2[%c0_1, %c0_2] : memref<80x128xf32, #tpu.memory_space<vmem>>, vector<80x128xf32>
    %cst = arith.constant dense<0.000000e+00> : vector<256x128xf32>
    %2 = tpu.matmul %0, %1, %cst {dimension_numbers = #tpu.dot_dimension_numbers<[1], [0], [0], [1], [0, 0, 1, 1], [], []>} : vector<256x80xf32>, vector<80x128xf32>, vector<256x128xf32> -> vector<256x128xf32>
    %c0_3 = arith.constant 0 : index
    %c0_4 = arith.constant 0 : index
    %3 = vector.load %arg3[%c0_3, %c0_4] : memref<1x128xf32, #tpu.memory_space<vmem>>, vector<1x128xf32>
    %4 = vector.broadcast %3 : vector<1x128xf32> to vector<256x128xf32>
    %5 = arith.addf %2, %4 : vector<256x128xf32>
    %cst_5 = arith.constant 0.000000e+00 : f32
    %6 = vector.broadcast %cst_5 : f32 to vector<256x128xf32>
    %7 = arith.maximumf %5, %6 : vector<256x128xf32>
    %c0_6 = arith.constant 0 : index
    %c0_7 = arith.constant 0 : index
    %8 = vector.load %arg4[%c0_6, %c0_7] : memref<128x128xf32, #tpu.memory_space<vmem>>, vector<128x128xf32>
    %cst_8 = arith.constant dense<0.000000e+00> : vector<256x128xf32>
    %9 = tpu.matmul %7, %8, %cst_8 {dimension_numbers = #tpu.dot_dimension_numbers<[1], [0], [0], [1], [0, 0, 1, 1], [], []>} : vector<256x128xf32>, vector<128x128xf32>, vector<256x128xf32> -> vector<256x128xf32>
    %c0_9 = arith.constant 0 : index
    %c0_10 = arith.constant 0 : index
    %10 = vector.load %arg5[%c0_9, %c0_10] : memref<1x128xf32, #tpu.memory_space<vmem>>, vector<1x128xf32>
    %11 = vector.broadcast %10 : vector<1x128xf32> to vector<256x128xf32>
    %12 = arith.addf %9, %11 : vector<256x128xf32>
    %cst_11 = arith.constant 0.000000e+00 : f32
    %13 = vector.broadcast %cst_11 : f32 to vector<256x128xf32>
    %14 = arith.maximumf %12, %13 : vector<256x128xf32>
    %c0_12 = arith.constant 0 : index
    %c0_13 = arith.constant 0 : index
    %15 = vector.load %arg6[%c0_12, %c0_13] : memref<128x128xf32, #tpu.memory_space<vmem>>, vector<128x128xf32>
    %cst_14 = arith.constant dense<0.000000e+00> : vector<256x128xf32>
    %16 = tpu.matmul %14, %15, %cst_14 {dimension_numbers = #tpu.dot_dimension_numbers<[1], [0], [0], [1], [0, 0, 1, 1], [], []>} : vector<256x128xf32>, vector<128x128xf32>, vector<256x128xf32> -> vector<256x128xf32>
    %c0_15 = arith.constant 0 : index
    %c0_16 = arith.constant 0 : index
    %17 = vector.load %arg7[%c0_15, %c0_16] : memref<1x128xf32, #tpu.memory_space<vmem>>, vector<1x128xf32>
    %18 = vector.broadcast %17 : vector<1x128xf32> to vector<256x128xf32>
    %19 = arith.addf %16, %18 : vector<256x128xf32>
    %cst_17 = arith.constant 0.000000e+00 : f32
    %20 = vector.broadcast %cst_17 : f32 to vector<256x128xf32>
    %21 = arith.maximumf %19, %20 : vector<256x128xf32>
    %c0_18 = arith.constant 0 : index
    %c0_19 = arith.constant 0 : index
    %22 = vector.load %arg8[%c0_18, %c0_19] : memref<256x128xf32, #tpu.memory_space<vmem>>, vector<256x128xf32>
    tpu.vector_store %arg8[%c0_18, %c0_19], %21 {strides = array<i32>} : memref<256x128xf32, #tpu.memory_space<vmem>>, vector<256x128xf32>,
    return
  }
  func.func @transform_0(%arg0: i32) -> (i32, i32) {
    %c0_i32 = arith.constant 0 : i32
    %c0_i32_0 = arith.constant 0 : i32
    return %arg0, %c0_i32 : i32, i32
  }
  func.func @transform_1(%arg0: i32) -> (i32, i32) {
    %c0_i32 = arith.constant 0 : i32
    %c0_i32_0 = arith.constant 0 : i32
    %c0_i32_1 = arith.constant 0 : i32
    return %c0_i32, %c0_i32_0 : i32, i32
  }
  func.func @transform_2(%arg0: i32) -> (i32, i32) {
    %c0_i32 = arith.constant 0 : i32
    %c0_i32_0 = arith.constant 0 : i32
    %c0_i32_1 = arith.constant 0 : i32
    return %c0_i32, %c0_i32_0 : i32, i32
  }
  func.func @transform_3(%arg0: i32) -> (i32, i32) {
    %c0_i32 = arith.constant 0 : i32
    %c0_i32_0 = arith.constant 0 : i32
    %c0_i32_1 = arith.constant 0 : i32
    return %c0_i32, %c0_i32_0 : i32, i32
  }
  func.func @transform_4(%arg0: i32) -> (i32, i32) {
    %c0_i32 = arith.constant 0 : i32
    %c0_i32_0 = arith.constant 0 : i32
    %c0_i32_1 = arith.constant 0 : i32
    return %c0_i32, %c0_i32_0 : i32, i32
  }
  func.func @transform_5(%arg0: i32) -> (i32, i32) {
    %c0_i32 = arith.constant 0 : i32
    %c0_i32_0 = arith.constant 0 : i32
    %c0_i32_1 = arith.constant 0 : i32
    return %c0_i32, %c0_i32_0 : i32, i32
  }
  func.func @transform_6(%arg0: i32) -> (i32, i32) {
    %c0_i32 = arith.constant 0 : i32
    %c0_i32_0 = arith.constant 0 : i32
    %c0_i32_1 = arith.constant 0 : i32
    return %c0_i32, %c0_i32_0 : i32, i32
  }
  func.func @transform_7(%arg0: i32) -> (i32, i32) {
    %c0_i32 = arith.constant 0 : i32
    %c0_i32_0 = arith.constant 0 : i32
    return %arg0, %c0_i32 : i32, i32
  }
}

</mosaic_0001>

<bundles_post_ra>
// kernel: tpu_custom_call.1
= control target key start
LH: loop header
LB: loop body
LE: loop exit
PB: predicated region body
PF: predicated region fallthrough
CT: control target
= control target key end

     0   :  { %12 = vsyncpa [#allocation3], 0  ;;  %s2472_s0 = inlined_call_operand.vmem [shape: f32[1024,80], index: 0, kind: input, shape index: {}]   ;;  %s2473_s1 = inlined_call_operand.vmem [shape: f32[80,128], index: 1, kind: input, shape index: {}]   ;;  %s2474_s2 = inlined_call_operand.vmem [shape: f32[1,128], index: 2, kind: input, shape index: {}]   ;;  %s2475_s3 = inlined_call_operand.vmem [shape: f32[128,128], index: 3, kind: input, shape index: {}]   ;;  %s2476_s4 = inlined_call_operand.vmem [shape: f32[1,128], index: 4, kind: input, shape index: {}]   ;;  %s2477_s5 = inlined_call_operand.vmem [shape: f32[128,128], index: 5, kind: input, shape index: {}]   ;;  %s2478_s6 = inlined_call_operand.vmem [shape: f32[1,128], index: 6, kind: input, shape index: {}]   ;;  %s2479_s7 = inlined_call_operand.hbm [shape: f32[1024,128], index: 7, kind: output, shape index: {}]  }
   0x1   :  { %14 = vsyncpa [#allocation3 + $0x1], 0  ;;  %s2007_s24 = smov 0   ;;  %s2009_s25 = smov 0  }
   0x2   :  { %s2011_s26 = smov 0   ;;  %s2013_s27 = smov 0  }
   0x3 LB: > { %s2028_s28 = sadd.s32 4294967295, %s1962_s27   ;;  %s1351_s29 = sadd.s32 4294967294, %s1962_s27   ;;  %s1962_s27 = sphi %s2013_s27, %s2485_s27   ;;  %s1958_s26 = sphi %s2011_s26, %s2484_s26   ;;  %s1954_s25 = sphi %s2009_s25, %s2483_s25   ;;  %s1950_s24 = sphi %s2007_s24, %s2482_s24  }
   0x4   : > { %s2032_s30 = sadd.s32 1, %s1962_s27   ;;  %s179_s8 = sadd.s32 1, %s1958_s26 }
   0x5   : > { %s176_s9 = ssub.s32 %s1962_s27, %s2032_s30  ;;  %p189_p0 = scmp.ne.s32.totalorder %s1958_s26, %s1954_s25 }
   0x6   : > { %p177_p1 = scmp.eq.s32.totalorder %s176_s9, 0  ;;  %p190_p2 = scmp.eq.s32.totalorder %s2028_s28, 3 }
   0x7   : > { %p195_p3 = scmp.ne.s32.totalorder %s1954_s25, %s1950_s24  ;;  %p196_p4 = scmp.eq.s32.totalorder %s1351_s29, 3 }
   0x8   : > { %s2043_s10 = scalar_select %p177_p1, %s1958_s26, %s179_s8  }
   0x9   : > { %p2045_p5 = por %p190_p2, %p189_p0  ;;  %p2049_p6 = por %p196_p4, %p195_p3 }
   0xa   : > { %p1354_p7 = scmp.ge.s32.totalorder %s1962_s27, 1  ;;  %p241_p8 = scmp.lt.s32.totalorder %s1962_s27, 5 }
   0xc   : > { %p242_p9 = pnand %p1354_p7, %p241_p8 }
   0xd   : > { %v312_v0 = vld [vmem:[%s2473_s1] sm:$0xff] (!%p242_p9)  ;;  %v313_v1 = vld [vmem:[%s2473_s1 + $0x8] sm:$0xff] (!%p242_p9)  ;;  %v314_v2 = vld [vmem:[%s2473_s1 + $0x10] sm:$0xff] (!%p242_p9)  ;;  %s1356_s19 = sshll.u32 (!%p242_p9), %s2028_s28, 5  ;;  %vm329_vm0 = vcmask (!%p242_p9), 654336   ;;  %s270_s29 = sand.u32 (!%p242_p9), 1, %s1954_s25  }
   0xe   : > { %245 = sbr.rel (%p242_p9) target bundleno = 764 (0x2fc), region = 48  ;;  %v1765_v3 = vpack.c.bf16 (!%p242_p9), %v313_v1, %v312_v0  ;;  %v315_v4 = vld [vmem:[%s2473_s1 + $0x18] sm:$0xff] (!%p242_p9)  ;;  %p274_p10 = scmp.lt.s32.totalorder (!%p242_p9), %s1356_s19, 127  ;;  %v316_v6 = vld [vmem:[%s2473_s1 + $0x20] sm:$0xff] (!%p242_p9)  ;;  %v317_v7 = vld [vmem:[%s2473_s1 + $0x28] sm:$0xff] (!%p242_p9) }
   0xf   : > { %v1769_v5 = vpack.c.bf16 (!%p242_p9), %v315_v4, %v314_v2  ;;  %v1773_v8 = vpack.c.bf16 (!%p242_p9), %v317_v7, %v316_v6  ;;  %v318_v9 = vld [vmem:[%s2473_s1 + $0x30] sm:$0xff] (!%p242_p9)  ;;  %v319_v10 = vld [vmem:[%s2473_s1 + $0x38] sm:$0xff] (!%p242_p9)  ;;  %v320_v13 = vld [vmem:[%s2473_s1 + $0x40] sm:$0xff] (!%p242_p9)  ;;  %s1355_s13 = sshll.u32 (!%p242_p9), %s270_s29, 8  ;;  %s1398_s15 = sshll.u32 (!%p242_p9), %s2028_s28, 12 }
  0x10   : > { %1766 = vmatprep.subr.bf16.mxu0 (!%p242_p9), %v1765_v3  ;;  %1849 = vmatprep.subr.bf16.mxu1 (!%p242_p9), %v1765_v3  ;;  %v1777_v12 = vpack.c.bf16 (!%p242_p9), %v319_v10, %v318_v9  ;;  %v321_v14 = vld [vmem:[%s2473_s1 + $0x48] sm:$0xff] (!%p242_p9)  ;;  %v683_v17 = vld [vmem:[%s2475_s3] sm:$0xff] (!%p242_p9)  ;;  %v685_v20 = vld [vmem:[%s2475_s3 + $0x10] sm:$0xff] (!%p242_p9)  ;;  %s2356_s14 = scalar_lea.vmem (!%p242_p9), [#allocation2], %s1355_s13  ;;  %s2423_s18 = scalar_lea.hbm (!%p242_p9), %s2479_s7, %s1398_s15 }
  0x11   : > { %1768 = vmatpush3.bf16.msra.mxu0 (!%p242_p9), %v1765_v3  ;;  %1854 = vmatpush3.bf16.msra.mxu1 (!%p242_p9), %v1765_v3  ;;  %v1781_v16 = vpack.c.bf16 (!%p242_p9), %v321_v14, %v320_v13  ;;  %v684_v18 = vld [vmem:[%s2475_s3 + $0x8] sm:$0xff] (!%p242_p9)  ;;  %v686_v21 = vld [vmem:[%s2475_s3 + $0x18] sm:$0xff] (!%p242_p9)  ;;  %v687_v27 = vld [vmem:[%s2475_s3 + $0x20] sm:$0xff] (!%p242_p9)  ;;  %s1289_s16 = sshll.u32 (!%p242_p9), %s2356_s14, 4  ;;  %s2431_s28 = scalar_lea.sflag (!%p242_p9), [#allocation3], %s270_s29  ;;  %s2425_s16 = int_to_ptr.vmem [resolvable:$true] %s1289_s16 }
  0x12   : > { %1770 = vmatprep.subr.bf16.mxu0 (!%p242_p9), %v1769_v5  ;;  %1850 = vmatprep.subr.bf16.mxu1 (!%p242_p9), %v1769_v5  ;;  %v1785_v19 = vpack.c.bf16 (!%p242_p9), %v684_v18, %v683_v17  ;;  %v1789_v26 = vpack.c.bf16 (!%p242_p9), %v686_v21, %v685_v20  ;;  %v688_v28 = vld [vmem:[%s2475_s3 + $0x28] sm:$0xff] (!%p242_p9)  ;;  %v689_v34 = vld [vmem:[%s2475_s3 + $0x30] sm:$0xff] (!%p242_p9)  ;;  %v690_v35 = vld [vmem:[%s2475_s3 + $0x38] sm:$0xff] (!%p242_p9)  ;;  %s1964_s21 = smov (!%p242_p9), [#allocation2]  }
  0x13   : > { %v1793_v33 = vpack.c.bf16 (!%p242_p9), %v688_v28, %v687_v27  ;;  %v1797_v40 = vpack.c.bf16 (!%p242_p9), %v690_v35, %v689_v34  ;;  %v691_v41 = vld [vmem:[%s2475_s3 + $0x40] sm:$0xff] (!%p242_p9)  ;;  %v692_v42 = vld [vmem:[%s2475_s3 + $0x48] sm:$0xff] (!%p242_p9)  ;;  %v693_v48 = vld [vmem:[%s2475_s3 + $0x50] sm:$0xff] (!%p242_p9)  ;;  %s1904_s22 = sshll.u32 (!%p242_p9), %s1964_s21, 4  ;;  %s1905_s22 = int_to_ptr.vmem [resolvable:$false] %s1904_s22 }
  0x14   : > { %v1801_v47 = vpack.c.bf16 (!%p242_p9), %v692_v42, %v691_v41  ;;  %v694_v49 = vld [vmem:[%s2475_s3 + $0x58] sm:$0xff] (!%p242_p9)  ;;  %v695_v55 = vld [vmem:[%s2475_s3 + $0x60] sm:$0xff] (!%p242_p9)  ;;  %v696_v56 = vld [vmem:[%s2475_s3 + $0x68] sm:$0xff] (!%p242_p9)  ;;  %s1906_s23 = scalar_lea.vmem (!%p242_p9), %s1905_s22, 8192  ;;  %p1907_p0 = scmp.lt.s32.totalorder (!%p242_p9), %s2425_s16, %s1905_s22 }
  0x15   : > { %s2487_s19 = smov (!%p274_p10, %s1356_s19), 127  ;;  %1772 = vmatpush3.bf16.msra.mxu0 %v1769_v5  ;;  %1855 = vmatpush3.bf16.msra.mxu1 %v1769_v5  ;;  %v1805_v54 = vpack.c.bf16 %v694_v49, %v693_v48  ;;  %v1809_v61 = vpack.c.bf16 %v696_v56, %v695_v55  ;;  %v697_v4 = vld [vmem:[%s2475_s3 + $0x70] sm:$0xff]  ;;  %v698_v5 = vld [vmem:[%s2475_s3 + $0x78] sm:$0xff]  ;;  %v963_v7 = vld [vmem:[%s2477_s5] sm:$0xff] }
  0x16   : > { %s1357_s9 = sshll.u32 %s2487_s19, 3  ;;  %1774 = vmatprep.subr.bf16.mxu0 %v1773_v8  ;;  %1851 = vmatprep.subr.bf16.mxu1 %v1773_v8  ;;  %v1813_v6 = vpack.c.bf16 %v698_v5, %v697_v4  ;;  %v965_v9 = vld [vmem:[%s2477_s5 + $0x10] sm:$0xff]  ;;  %v967_v13 = vld [vmem:[%s2477_s5 + $0x20] sm:$0xff]  ;;  %v968_v14 = vld [vmem:[%s2477_s5 + $0x28] sm:$0xff]  ;;  %s1900_s19 = scalar_lea.vmem %s2425_s16, 4096 }
  0x17   : > { %s2083_s20 = scalar_lea.vmem %s2472_s0, %s1357_s9  ;;  %v970_v17 = vld [vmem:[%s2477_s5 + $0x38] sm:$0xff]  ;;  %v972_v20 = vld [vmem:[%s2477_s5 + $0x48] sm:$0xff]  ;;  %v2248_v28 = vld [vmem:[%s2474_s2] ss:$0 sm:$0xff]  ;;  %p1901_p11 = scmp.ne.s32.totalorder %s2425_s16, %s1900_s19 }
  0x18   : > { %v280_v11 = vld [vmem:[%s2083_s20] sm:$0xff]  ;;  %v281_v22 = vld [vmem:[%s2083_s20 + $0x8] sm:$0xff]  ;;  %v282_v23 = vld [vmem:[%s2083_s20 + $0x10] sm:$0xff]  ;;  %p1908_p1 = scmp.lt.s32.totalorder %s1906_s23, %s1900_s19 }
  0x19   : > { %1557 = vmatprep.mubr.msk.f32.mxu0 %vm329_vm0, %v280_v11  ;;  %1776 = vmatpush3.bf16.msra.mxu0 %v1773_v8  ;;  %v296_v15 = vld [vmem:[%s2083_s20 + $0x80] sm:$0xff]  ;;  %v297_v24 = vld [vmem:[%s2083_s20 + $0x88] sm:$0xff]  ;;  %v298_v25 = vld [vmem:[%s2083_s20 + $0x90] sm:$0xff]  ;;  %p1902_p12 = pnand %p1901_p11, %p2045_p5 }
  0x1a   : > { %1778 = vmatprep.subr.bf16.mxu0 %v1777_v12  ;;  %1856 = vmatpush3.bf16.msra.mxu1 %v1773_v8  ;;  %v283_v29 = vld [vmem:[%s2083_s20 + $0x18] sm:$0xff]  ;;  %v284_v30 = vld [vmem:[%s2083_s20 + $0x20] sm:$0xff]  ;;  %v285_v36 = vld [vmem:[%s2083_s20 + $0x28] sm:$0xff]  ;;  %p1909_p2 = por %p1908_p1, %p1907_p0 }
  0x1b   : > { %1852 = vmatprep.subr.bf16.mxu1 %v1777_v12  ;;  %1581 = vmatprep.mubr.msk.f32.mxu1 %vm329_vm0, %v296_v15  ;;  %v299_v31 = vld [vmem:[%s2083_s20 + $0x98] sm:$0xff]  ;;  %v300_v32 = vld [vmem:[%s2083_s20 + $0xa0] sm:$0xff]  ;;  %v286_v37 = vld [vmem:[%s2083_s20 + $0x30] sm:$0xff]  ;;  %v1825_v15 = vpack.c.bf16 %v968_v14, %v967_v13  ;;  %p1903_p13 = pneg %p1902_p12 }
  0x1c   : > { %v301_v38 = vld [vmem:[%s2083_s20 + $0xa8] sm:$0xff]  ;;  %v302_v39 = vld [vmem:[%s2083_s20 + $0xb0] sm:$0xff]  ;;  %v287_v43 = vld [vmem:[%s2083_s20 + $0x38] sm:$0xff] }
  0x1d   : > { %1780 = vmatpush3.bf16.msra.mxu0 %v1777_v12  ;;  %v288_v44 = vld [vmem:[%s2083_s20 + $0x40] sm:$0xff]  ;;  %v303_v45 = vld [vmem:[%s2083_s20 + $0xb8] sm:$0xff]  ;;  %v289_v50 = vld [vmem:[%s2083_s20 + $0x48] sm:$0xff]  ;;  %p1910_p3 = pnand %p1909_p2, %p1903_p13 }
  0x1e   : > { %1782 = vmatprep.subr.bf16.mxu0 %v1781_v16  ;;  %1857 = vmatpush3.bf16.msra.mxu1 %v1777_v12  ;;  %v304_v46 = vld [vmem:[%s2083_s20 + $0xc0] sm:$0xff]  ;;  %v290_v51 = vld [vmem:[%s2083_s20 + $0x50] sm:$0xff]  ;;  %v305_v52 = vld [vmem:[%s2083_s20 + $0xc8] sm:$0xff] }
  0x1f   : > { %1853 = vmatprep.subr.bf16.mxu1 %v1781_v16  ;;  %v306_v53 = vld [vmem:[%s2083_s20 + $0xd0] sm:$0xff]  ;;  %v291_v57 = vld [vmem:[%s2083_s20 + $0x58] sm:$0xff]  ;;  %v292_v58 = vld [vmem:[%s2083_s20 + $0x60] sm:$0xff] }
  0x20   : > { %v307_v59 = vld [vmem:[%s2083_s20 + $0xd8] sm:$0xff]  ;;  %v308_v60 = vld [vmem:[%s2083_s20 + $0xe0] sm:$0xff]  ;;  %v293_v62 = vld [vmem:[%s2083_s20 + $0x68] sm:$0xff] }
  0x21   : > { %1784 = vmatpush3.bf16.msra.mxu0 %v1781_v16  ;;  %v294_v63 = vld [vmem:[%s2083_s20 + $0x70] sm:$0xff]  ;;  %v309_v0 = vld [vmem:[%s2083_s20 + $0xe8] sm:$0xff]  ;;  %v295_v2 = vld [vmem:[%s2083_s20 + $0x78] sm:$0xff] }
  0x22   : > { %1858 = vmatpush3.bf16.msra.mxu1 %v1781_v16  ;;  %v310_v1 = vld [vmem:[%s2083_s20 + $0xf0] sm:$0xff]  ;;  %v311_v3 = vld [vmem:[%s2083_s20 + $0xf8] sm:$0xff]  ;;  %v964_v8 = vld [vmem:[%s2477_s5 + $0x8] sm:$0xff] }
  0x23   : > { %1786 = vmatprep.subr.bf16.mxu1 %v1785_v19  ;;  %v1817_v10 = vpack.c.bf16 %v964_v8, %v963_v7  ;;  %v966_v11 = vld [vmem:[%s2477_s5 + $0x18] sm:$0xff]  ;;  %v969_v16 = vld [vmem:[%s2477_s5 + $0x30] sm:$0xff] }
  0x24   : > { %1558 = vmatmul.mubr.msk.f32.vlgmr.msra.gmra.mrb[0].mxu0 %vm329_vm0, %v281_v22  ;;  %v1821_v12 = vpack.c.bf16 %v966_v11, %v965_v9  ;;  %v1829_v18 = vpack.c.bf16 %v970_v17, %v969_v16  ;;  %v973_v22 = vld [vmem:[%s2477_s5 + $0x50] sm:$0xff] }
  0x25   : > { %1560 = vmatprep.mubr.msk.f32.mxu0 %vm329_vm0, %v282_v23  ;;  %1582 = vmatmul.mubr.msk.f32.vlgmr.msra.gmra.mrb[0].mxu1 %vm329_vm0, %v297_v24  ;;  %v974_v23 = vld [vmem:[%s2477_s5 + $0x58] sm:$0xff] }
  0x26   : > { %1584 = vmatprep.mubr.msk.f32.mxu1 %vm329_vm0, %v298_v25  ;;  %1788 = vmatpush3.bf16.msra.mxu1 %v1785_v19  ;;  %v971_v19 = vld [vmem:[%s2477_s5 + $0x40] sm:$0xff]  ;;  %v1837_v24 = vpack.c.bf16 %v974_v23, %v973_v22 }
  0x27   : > { %1790 = vmatprep.subr.bf16.mxu1 %v1789_v26  ;;  %1818 = vmatprep.subr.bf16.mxu0 %v1817_v10  ;;  %v1833_v21 = vpack.c.bf16 %v972_v20, %v971_v19  ;;  %v975_v25 = vld [vmem:[%s2477_s5 + $0x60] sm:$0xff] }
  0x28   : > { %1561 = vmatmul.mubr.msk.f32.gmra.mrb[2].mxu0 %vm329_vm0, %v283_v29 }
  0x29   : > { %1563 = vmatprep.mubr.msk.f32.mxu0 %vm329_vm0, %v284_v30  ;;  %1585 = vmatmul.mubr.msk.f32.gmra.mrb[2].mxu1 %vm329_vm0, %v299_v31 }
  0x2a   : > { %1587 = vmatprep.mubr.msk.f32.mxu1 %vm329_vm0, %v300_v32  ;;  %1792 = vmatpush3.bf16.msra.mxu1 %v1789_v26  ;;  %v976_v26 = vld [vmem:[%s2477_s5 + $0x68] sm:$0xff] }
  0x2b   : > { %1794 = vmatprep.subr.bf16.mxu1 %v1793_v33  ;;  %1820 = vmatpush3.bf16.msra.mxu0 %v1817_v10  ;;  %v1841_v27 = vpack.c.bf16 %v976_v26, %v975_v25 }
  0x2c   : > { %1564 = vmatmul.mubr.msk.f32.gmra.mrb[4].mxu0 %vm329_vm0, %v285_v36  ;;  %1822 = vmatprep.subr.bf16.mxu0 %v1821_v12 }
  0x2d   : > { %1566 = vmatprep.mubr.msk.f32.mxu0 %vm329_vm0, %v286_v37  ;;  %1588 = vmatmul.mubr.msk.f32.gmra.mrb[4].mxu1 %vm329_vm0, %v301_v38 }
  0x2e   : > { %1590 = vmatprep.mubr.msk.f32.mxu1 %vm329_vm0, %v302_v39  ;;  %1796 = vmatpush3.bf16.msra.mxu1 %v1793_v33 }
  0x2f   : > { %1798 = vmatprep.subr.bf16.mxu1 %v1797_v40  ;;  %1824 = vmatpush3.bf16.msra.mxu0 %v1821_v12 }
  0x30   : > { %1567 = vmatmul.mubr.msk.f32.gmra.mrb[6].mxu0 %vm329_vm0, %v287_v43  ;;  %1826 = vmatprep.subr.bf16.mxu0 %v1825_v15 }
  0x31   : > { %1569 = vmatprep.mubr.msk.f32.mxu0 %vm329_vm0, %v288_v44  ;;  %1591 = vmatmul.mubr.msk.f32.gmra.mrb[6].mxu1 %vm329_vm0, %v303_v45 }
  0x32   : > { %1593 = vmatprep.mubr.msk.f32.mxu1 %vm329_vm0, %v304_v46  ;;  %1800 = vmatpush3.bf16.msra.mxu1 %v1797_v40 }
  0x33   : > { %1802 = vmatprep.subr.bf16.mxu1 %v1801_v47  ;;  %1828 = vmatpush3.bf16.msra.mxu0 %v1825_v15 }
  0x34   : > { %1570 = vmatmul.mubr.msk.f32.gmra.mrb[8].mxu0 %vm329_vm0, %v289_v50  ;;  %1830 = vmatprep.subr.bf16.mxu0 %v1829_v18 }
  0x35   : > { %1572 = vmatprep.mubr.msk.f32.mxu0 %vm329_vm0, %v290_v51  ;;  %1594 = vmatmul.mubr.msk.f32.gmra.mrb[8].mxu1 %vm329_vm0, %v305_v52 }
  0x36   : > { %1596 = vmatprep.mubr.msk.f32.mxu1 %vm329_vm0, %v306_v53  ;;  %1804 = vmatpush3.bf16.msra.mxu1 %v1801_v47 }
  0x37   : > { %1806 = vmatprep.subr.bf16.mxu1 %v1805_v54  ;;  %1832 = vmatpush3.bf16.msra.mxu0 %v1829_v18 }
  0x38   : > { %1573 = vmatmul.mubr.msk.f32.gmra.mrb[10].mxu0 %vm329_vm0, %v291_v57  ;;  %1834 = vmatprep.subr.bf16.mxu0 %v1833_v21 }
  0x39   : > { %1575 = vmatprep.mubr.msk.f32.mxu0 %vm329_vm0, %v292_v58  ;;  %1597 = vmatmul.mubr.msk.f32.gmra.mrb[10].mxu1 %vm329_vm0, %v307_v59 }
  0x3a   : > { %1599 = vmatprep.mubr.msk.f32.mxu1 %vm329_vm0, %v308_v60  ;;  %1808 = vmatpush3.bf16.msra.mxu1 %v1805_v54 }
  0x3b   : > { %1810 = vmatprep.subr.bf16.mxu1 %v1809_v61  ;;  %1836 = vmatpush3.bf16.msra.mxu0 %v1833_v21 }
  0x3c   : > { %1576 = vmatmul.mubr.msk.f32.gmra.mrb[12].mxu0 %vm329_vm0, %v293_v62  ;;  %1838 = vmatprep.subr.bf16.mxu0 %v1837_v24 }
  0x3d   : > { %1578 = vmatprep.mubr.msk.f32.mxu0 %vm329_vm0, %v294_v63  ;;  %1600 = vmatmul.mubr.msk.f32.gmra.mrb[12].mxu1 %vm329_vm0, %v309_v0 }
  0x3e   : > { %1602 = vmatprep.mubr.msk.f32.mxu1 %vm329_vm0, %v310_v1  ;;  %1812 = vmatpush3.bf16.msra.mxu1 %v1809_v61 }
  0x3f   : > { %1814 = vmatprep.subr.bf16.mxu1 %v1813_v6  ;;  %1840 = vmatpush3.bf16.msra.mxu0 %v1837_v24 }
  0x40   : > { %1579 = vmatmul.mubr.msk.f32.gmra.mrb[14].mxu0 %vm329_vm0, %v295_v2  ;;  %1842 = vmatprep.subr.bf16.mxu0 %v1841_v27 }
  0x41   : > { %1603 = vmatmul.mubr.msk.f32.gmra.mrb[14].mxu1 %vm329_vm0, %v311_v3 }
  0x42   : > { %1816 = vmatpush3.bf16.msra.mxu1 %v1813_v6 }
  0x43   : > { %1844 = vmatpush3.bf16.msra.mxu0 %v1841_v27 }
  0xf7   : > { %v1559_v29 = vpop.f32.mrb[0].mxu0 }
  0xf8   : > { %v498_v30 = vadd.f32 %v1559_v29, %v2248_v28  ;;  %v492_v31 = vpop.f32.mrb[1].mxu0  ;;  %v2251_v32 = vpop.f32.mrb[0].mxu1 }
  0xf9   : > { %v493_v33 = vadd.f32 %v2248_v28, %v492_v31  ;;  %v2254_v34 = vpop.f32.mrb[1].mxu1 }
  0xfa   : > { %v652_v37 = vmax.f32 %v498_v30, 0.0  ;;  %v573_v21 = vadd.f32 %v2248_v28, %v2254_v34 }
  0xfb   : > { %v651_v35 = vmax.f32 %v493_v33, 0.0  ;;  %v1562_v36 = vpop.f32.mrb[2].mxu0 }
  0xfc   : > { %v508_v38 = vadd.f32 %v1562_v36, %v2248_v28  ;;  %v502_v39 = vpop.f32.mrb[3].mxu0  ;;  %v2257_v40 = vpop.f32.mrb[2].mxu1  ;;  %v667_v30 = vmax.f32 %v573_v21, 0.0 }
  0xfd   : > { %v503_v41 = vadd.f32 %v2248_v28, %v502_v39  ;;  %1637 = vmatprep.mubr.f32.mxu1 %v651_v35  ;;  %v2260_v42 = vpop.f32.mrb[3].mxu1  ;;  %v578_v35 = vadd.f32 %v2251_v32, %v2248_v28 }
  0xfe   : > { %1638 = vmatmul.mubr.f32.vlgmr.msra.gmra.mrb[16].mxu1 %v652_v37  ;;  %v654_v45 = vmax.f32 %v508_v38, 0.0  ;;  %v583_v31 = vadd.f32 %v2248_v28, %v2260_v42  ;;  %v588_v38 = vadd.f32 %v2257_v40, %v2248_v28 }
  0xff   : > { %v653_v43 = vmax.f32 %v503_v41, 0.0  ;;  %v1565_v44 = vpop.f32.mrb[4].mxu0  ;;  %v668_v37 = vmax.f32 %v578_v35, 0.0 }
 0x100   : > { %v518_v46 = vadd.f32 %v1565_v44, %v2248_v28  ;;  %v512_v47 = vpop.f32.mrb[5].mxu0  ;;  %v2263_v48 = vpop.f32.mrb[4].mxu1  ;;  %v669_v34 = vmax.f32 %v583_v31, 0.0  ;;  %v670_v42 = vmax.f32 %v588_v38, 0.0 }
 0x101   : > { %v513_v49 = vadd.f32 %v2248_v28, %v512_v47  ;;  %1640 = vmatprep.mubr.f32.mxu1 %v653_v43  ;;  %v592_v50 = vpop.f32.mrb[5].mxu1  ;;  %v598_v43 = vadd.f32 %v2263_v48, %v2248_v28 }
 0x102   : > { %1641 = vmatmul.mubr.f32.gmra.mrb[18].mxu1 %v654_v45  ;;  %v656_v53 = vmax.f32 %v518_v46, 0.0  ;;  %v593_v36 = vadd.f32 %v2248_v28, %v592_v50 }
 0x103   : > { %v655_v51 = vmax.f32 %v513_v49, 0.0  ;;  %v1568_v52 = vpop.f32.mrb[6].mxu0  ;;  %v672_v45 = vmax.f32 %v598_v43, 0.0 }
 0x104   : > { %v528_v54 = vadd.f32 %v1568_v52, %v2248_v28  ;;  %v522_v55 = vpop.f32.mrb[7].mxu0  ;;  %v2267_v56 = vpop.f32.mrb[6].mxu1  ;;  %v671_v39 = vmax.f32 %v593_v36, 0.0 }
 0x105   : > { %v523_v57 = vadd.f32 %v2248_v28, %v522_v55  ;;  %1643 = vmatprep.mubr.f32.mxu1 %v655_v51  ;;  %v602_v58 = vpop.f32.mrb[7].mxu1  ;;  %v608_v46 = vadd.f32 %v2267_v56, %v2248_v28 }
 0x106   : > { %1644 = vmatmul.mubr.f32.gmra.mrb[20].mxu1 %v656_v53  ;;  %v658_v61 = vmax.f32 %v528_v54, 0.0  ;;  %v603_v41 = vadd.f32 %v2248_v28, %v602_v58 }
 0x107   : > { %v657_v59 = vmax.f32 %v523_v57, 0.0  ;;  %v1571_v60 = vpop.f32.mrb[8].mxu0  ;;  %v674_v49 = vmax.f32 %v608_v46, 0.0 }
 0x108   : > { %v538_v62 = vadd.f32 %v1571_v60, %v2248_v28  ;;  %v532_v63 = vpop.f32.mrb[9].mxu0  ;;  %v2271_v0 = vpop.f32.mrb[8].mxu1  ;;  %v673_v32 = vmax.f32 %v603_v41, 0.0 }
 0x109   : > { %v533_v1 = vadd.f32 %v2248_v28, %v532_v63  ;;  %1646 = vmatprep.mubr.f32.mxu1 %v657_v59  ;;  %v612_v2 = vpop.f32.mrb[9].mxu1  ;;  %v618_v50 = vadd.f32 %v2271_v0, %v2248_v28  ;;  %v978_v63 = vld [vmem:[%s2477_s5 + $0x78] sm:$0xff] }
 0x10a   : > { %1647 = vmatmul.mubr.f32.gmra.mrb[22].mxu1 %v658_v61  ;;  %v660_v5 = vmax.f32 %v538_v62, 0.0  ;;  %v613_v44 = vadd.f32 %v2248_v28, %v612_v2  ;;  %v977_v62 = vld [vmem:[%s2477_s5 + $0x70] sm:$0xff] }
 0x10b   : > { %v659_v3 = vmax.f32 %v533_v1, 0.0  ;;  %v1574_v4 = vpop.f32.mrb[10].mxu0  ;;  %v676_v52 = vmax.f32 %v618_v50, 0.0  ;;  %v1845_v0 = vpack.c.bf16 %v978_v63, %v977_v62  ;;  %v2312_v1 = vld [vmem:[%s2476_s4] ss:$0 sm:$0xff] }
 0x10c   : > { %v548_v6 = vadd.f32 %v1574_v4, %v2248_v28  ;;  %v542_v7 = vpop.f32.mrb[11].mxu0  ;;  %v1598_v8 = vpop.f32.mrb[10].mxu1  ;;  %v675_v40 = vmax.f32 %v613_v44, 0.0 }
 0x10d   : > { %v543_v9 = vadd.f32 %v2248_v28, %v542_v7  ;;  %1649 = vmatprep.mubr.f32.mxu1 %v659_v3  ;;  %v622_v10 = vpop.f32.mrb[11].mxu1  ;;  %v628_v53 = vadd.f32 %v1598_v8, %v2248_v28  ;;  %1846 = vmatprep.subr.bf16.mxu0 %v1845_v0 }
 0x10e   : > { %1650 = vmatmul.mubr.f32.gmra.mrb[24].mxu1 %v660_v5  ;;  %v662_v13 = vmax.f32 %v548_v6, 0.0  ;;  %v623_v47 = vadd.f32 %v2248_v28, %v622_v10  ;;  %1848 = vmatpush3.bf16.msra.mxu0 %v1845_v0 }
 0x10f   : > { %v661_v11 = vmax.f32 %v543_v9, 0.0  ;;  %v1577_v12 = vpop.f32.mrb[12].mxu0  ;;  %v678_v56 = vmax.f32 %v628_v53, 0.0 }
 0x110   : > { %v558_v14 = vadd.f32 %v1577_v12, %v2248_v28  ;;  %v552_v15 = vpop.f32.mrb[13].mxu0  ;;  %v1601_v16 = vpop.f32.mrb[12].mxu1  ;;  %v677_v48 = vmax.f32 %v623_v47, 0.0 }
 0x111   : > { %v553_v17 = vadd.f32 %v2248_v28, %v552_v15  ;;  %1652 = vmatprep.mubr.f32.mxu1 %v661_v11  ;;  %v632_v18 = vpop.f32.mrb[13].mxu1  ;;  %v638_v57 = vadd.f32 %v1601_v16, %v2248_v28 }
 0x112   : > { %1653 = vmatmul.mubr.f32.gmra.mrb[26].mxu1 %v662_v13  ;;  %v664_v22 = vmax.f32 %v558_v14, 0.0  ;;  %v633_v51 = vadd.f32 %v2248_v28, %v632_v18 }
 0x113   : > { %v663_v19 = vmax.f32 %v553_v17, 0.0  ;;  %v1580_v20 = vpop.f32.mrb[14].mxu0  ;;  %v680_v59 = vmax.f32 %v638_v57, 0.0 }
 0x114   : > { %v568_v23 = vadd.f32 %v1580_v20, %v2248_v28  ;;  %v562_v24 = vpop.f32.mrb[15].mxu0  ;;  %v1604_v25 = vpop.f32.mrb[14].mxu1  ;;  %v679_v54 = vmax.f32 %v633_v51, 0.0 }
 0x115   : > { %v563_v26 = vadd.f32 %v2248_v28, %v562_v24  ;;  %1655 = vmatprep.mubr.f32.mxu1 %v663_v19  ;;  %v642_v27 = vpop.f32.mrb[15].mxu1  ;;  %v648_v60 = vadd.f32 %v1604_v25, %v2248_v28 }
 0x116   : > { %1656 = vmatmul.mubr.f32.gmra.mrb[28].mxu1 %v664_v22  ;;  %v666_v33 = vmax.f32 %v568_v23, 0.0  ;;  %v643_v55 = vadd.f32 %v2248_v28, %v642_v27 }
 0x117   : > { %v665_v29 = vmax.f32 %v563_v26, 0.0  ;;  %v682_v61 = vmax.f32 %v648_v60, 0.0 }
 0x118   : > { %v681_v58 = vmax.f32 %v643_v55, 0.0 }
 0x119   : > { %1658 = vmatprep.mubr.f32.mxu1 %v665_v29 }
 0x11a   : > { %1659 = vmatmul.mubr.f32.gmra.mrb[30].mxu1 %v666_v33 }
 0x11b   : > { %1661 = vmatprep.mubr.f32.mxu1 %v667_v30 }
 0x11e   : > { %1662 = vmatmul.mubr.f32.gmra.mrb[32].mxu1 %v668_v37 }
 0x11f   : > { %1664 = vmatprep.mubr.f32.mxu1 %v669_v34 }
 0x122   : > { %1665 = vmatmul.mubr.f32.gmra.mrb[34].mxu1 %v670_v42 }
 0x123   : > { %1667 = vmatprep.mubr.f32.mxu1 %v671_v39 }
 0x126   : > { %1668 = vmatmul.mubr.f32.gmra.mrb[36].mxu1 %v672_v45 }
 0x127   : > { %1670 = vmatprep.mubr.f32.mxu1 %v673_v32 }
 0x12a   : > { %1671 = vmatmul.mubr.f32.gmra.mrb[38].mxu1 %v674_v49 }
 0x12b   : > { %1673 = vmatprep.mubr.f32.mxu1 %v675_v40 }
 0x12e   : > { %1674 = vmatmul.mubr.f32.gmra.mrb[40].mxu1 %v676_v52 }
 0x12f   : > { %1676 = vmatprep.mubr.f32.mxu1 %v677_v48 }
 0x132   : > { %1677 = vmatmul.mubr.f32.gmra.mrb[42].mxu1 %v678_v56 }
 0x133   : > { %1679 = vmatprep.mubr.f32.mxu1 %v679_v54 }
 0x136   : > { %1680 = vmatmul.mubr.f32.gmra.mrb[44].mxu1 %v680_v59 }
 0x137   : > { %1682 = vmatprep.mubr.f32.mxu1 %v681_v58 }
 0x13a   : > { %1683 = vmatmul.mubr.f32.gmra.mrb[46].mxu1 %v682_v61 }
 0x1d1   : > { %v1639_v28 = vpop.f32.mrb[16].mxu1 }
 0x1d2   : > { %v778_v2 = vadd.f32 %v1639_v28, %v2312_v1  ;;  %v772_v3 = vpop.f32.mrb[17].mxu1 }
 0x1d3   : > { %v773_v4 = vadd.f32 %v2312_v1, %v772_v3 }
 0x1d4   : > { %v932_v7 = vmax.f32 %v778_v2, 0.0 }
 0x1d5   : > { %v931_v5 = vmax.f32 %v773_v4, 0.0  ;;  %v1642_v6 = vpop.f32.mrb[18].mxu1 }
 0x1d6   : > { %v788_v8 = vadd.f32 %v1642_v6, %v2312_v1  ;;  %v782_v9 = vpop.f32.mrb[19].mxu1 }
 0x1d7   : > { %v783_v10 = vadd.f32 %v2312_v1, %v782_v9  ;;  %1717 = vmatprep.mubr.f32.mxu0 %v931_v5 }
 0x1d8   : > { %1718 = vmatmul.mubr.f32.vlgmr.msra.gmra.mrb[16].mxu0 %v932_v7  ;;  %v934_v13 = vmax.f32 %v788_v8, 0.0 }
 0x1d9   : > { %v933_v11 = vmax.f32 %v783_v10, 0.0  ;;  %v1645_v12 = vpop.f32.mrb[20].mxu1 }
 0x1da   : > { %v798_v14 = vadd.f32 %v1645_v12, %v2312_v1  ;;  %v792_v15 = vpop.f32.mrb[21].mxu1 }
 0x1db   : > { %v793_v16 = vadd.f32 %v2312_v1, %v792_v15  ;;  %1720 = vmatprep.mubr.f32.mxu0 %v933_v11 }
 0x1dc   : > { %1721 = vmatmul.mubr.f32.gmra.mrb[18].mxu0 %v934_v13  ;;  %v936_v19 = vmax.f32 %v798_v14, 0.0 }
 0x1dd   : > { %v935_v17 = vmax.f32 %v793_v16, 0.0  ;;  %v1648_v18 = vpop.f32.mrb[22].mxu1 }
 0x1de   : > { %v808_v20 = vadd.f32 %v1648_v18, %v2312_v1  ;;  %v802_v21 = vpop.f32.mrb[23].mxu1 }
 0x1df   : > { %v803_v22 = vadd.f32 %v2312_v1, %v802_v21  ;;  %1723 = vmatprep.mubr.f32.mxu0 %v935_v17 }
 0x1e0   : > { %1724 = vmatmul.mubr.f32.gmra.mrb[20].mxu0 %v936_v19  ;;  %v938_v25 = vmax.f32 %v808_v20, 0.0 }
 0x1e1   : > { %v937_v23 = vmax.f32 %v803_v22, 0.0  ;;  %v1651_v24 = vpop.f32.mrb[24].mxu1 }
 0x1e2   : > { %v818_v26 = vadd.f32 %v1651_v24, %v2312_v1  ;;  %v812_v27 = vpop.f32.mrb[25].mxu1 }
 0x1e3   : > { %v813_v29 = vadd.f32 %v2312_v1, %v812_v27  ;;  %1726 = vmatprep.mubr.f32.mxu0 %v937_v23 }
 0x1e4   : > { %1727 = vmatmul.mubr.f32.gmra.mrb[22].mxu0 %v938_v25  ;;  %v940_v33 = vmax.f32 %v818_v26, 0.0 }
 0x1e5   : > { %v939_v30 = vmax.f32 %v813_v29, 0.0  ;;  %v1654_v31 = vpop.f32.mrb[26].mxu1 }
 0x1e6   : > { %v828_v35 = vadd.f32 %v1654_v31, %v2312_v1  ;;  %v822_v34 = vpop.f32.mrb[27].mxu1 }
 0x1e7   : > { %v823_v36 = vadd.f32 %v2312_v1, %v822_v34  ;;  %1729 = vmatprep.mubr.f32.mxu0 %v939_v30 }
 0x1e8   : > { %1730 = vmatmul.mubr.f32.gmra.mrb[24].mxu0 %v940_v33  ;;  %v942_v39 = vmax.f32 %v828_v35, 0.0 }
 0x1e9   : > { %v941_v37 = vmax.f32 %v823_v36, 0.0  ;;  %v1657_v38 = vpop.f32.mrb[28].mxu1  ;;  %v2350_v36 = vld [vmem:[%s2478_s6] ss:$0 sm:$0xff] }
 0x1ea   : > { %v838_v41 = vadd.f32 %v1657_v38, %v2312_v1  ;;  %v832_v42 = vpop.f32.mrb[29].mxu1 }
 0x1eb   : > { %v833_v43 = vadd.f32 %v2312_v1, %v832_v42  ;;  %1732 = vmatprep.mubr.f32.mxu0 %v941_v37 }
 0x1ec   : > { %1733 = vmatmul.mubr.f32.gmra.mrb[26].mxu0 %v942_v39  ;;  %v944_v45 = vmax.f32 %v838_v41, 0.0 }
 0x1ed   : > { %v943_v32 = vmax.f32 %v833_v43, 0.0  ;;  %v1660_v44 = vpop.f32.mrb[30].mxu1 }
 0x1ee   : > { %v848_v46 = vadd.f32 %v1660_v44, %v2312_v1  ;;  %v842_v40 = vpop.f32.mrb[31].mxu1 }
 0x1ef   : > { %v843_v47 = vadd.f32 %v2312_v1, %v842_v40  ;;  %1735 = vmatprep.mubr.f32.mxu0 %v943_v32 }
 0x1f0   : > { %1736 = vmatmul.mubr.f32.gmra.mrb[28].mxu0 %v944_v45  ;;  %v946_v48 = vmax.f32 %v848_v46, 0.0 }
 0x1f1   : > { %v945_v49 = vmax.f32 %v843_v47, 0.0  ;;  %v1663_v50 = vpop.f32.mrb[32].mxu1 }
 0x1f2   : > { %v858_v51 = vadd.f32 %v1663_v50, %v2312_v1  ;;  %v852_v52 = vpop.f32.mrb[33].mxu1 }
 0x1f3   : > { %v853_v53 = vadd.f32 %v2312_v1, %v852_v52  ;;  %1738 = vmatprep.mubr.f32.mxu0 %v945_v49 }
 0x1f4   : > { %1739 = vmatmul.mubr.f32.gmra.mrb[30].mxu0 %v946_v48  ;;  %v948_v56 = vmax.f32 %v858_v51, 0.0 }
 0x1f5   : > { %v947_v54 = vmax.f32 %v853_v53, 0.0  ;;  %v1666_v55 = vpop.f32.mrb[34].mxu1 }
 0x1f6   : > { %v868_v57 = vadd.f32 %v1666_v55, %v2312_v1  ;;  %v862_v58 = vpop.f32.mrb[35].mxu1 }
 0x1f7   : > { %v863_v59 = vadd.f32 %v2312_v1, %v862_v58  ;;  %1741 = vmatprep.mubr.f32.mxu0 %v947_v54 }
 0x1f8   : > { %1742 = vmatmul.mubr.f32.gmra.mrb[32].mxu0 %v948_v56  ;;  %v950_v62 = vmax.f32 %v868_v57, 0.0 }
 0x1f9   : > { %v949_v60 = vmax.f32 %v863_v59, 0.0  ;;  %v1669_v61 = vpop.f32.mrb[36].mxu1 }
 0x1fa   : > { %v878_v63 = vadd.f32 %v1669_v61, %v2312_v1  ;;  %v872_v0 = vpop.f32.mrb[37].mxu1 }
 0x1fb   : > { %v873_v28 = vadd.f32 %v2312_v1, %v872_v0  ;;  %1744 = vmatprep.mubr.f32.mxu0 %v949_v60 }
 0x1fc   : > { %1745 = vmatmul.mubr.f32.gmra.mrb[34].mxu0 %v950_v62  ;;  %v952_v4 = vmax.f32 %v878_v63, 0.0 }
 0x1fd   : > { %v951_v2 = vmax.f32 %v873_v28, 0.0  ;;  %v1672_v3 = vpop.f32.mrb[38].mxu1 }
 0x1fe   : > { %v888_v5 = vadd.f32 %v1672_v3, %v2312_v1  ;;  %v882_v6 = vpop.f32.mrb[39].mxu1 }
 0x1ff   : > { %v883_v7 = vadd.f32 %v2312_v1, %v882_v6  ;;  %1747 = vmatprep.mubr.f32.mxu0 %v951_v2 }
 0x200   : > { %1748 = vmatmul.mubr.f32.gmra.mrb[36].mxu0 %v952_v4  ;;  %v954_v10 = vmax.f32 %v888_v5, 0.0 }
 0x201   : > { %v953_v8 = vmax.f32 %v883_v7, 0.0  ;;  %v1675_v9 = vpop.f32.mrb[40].mxu1 }
 0x202   : > { %v898_v11 = vadd.f32 %v1675_v9, %v2312_v1  ;;  %v892_v12 = vpop.f32.mrb[41].mxu1 }
 0x203   : > { %v893_v13 = vadd.f32 %v2312_v1, %v892_v12  ;;  %1750 = vmatprep.mubr.f32.mxu0 %v953_v8 }
 0x204   : > { %1751 = vmatmul.mubr.f32.gmra.mrb[38].mxu0 %v954_v10  ;;  %v956_v16 = vmax.f32 %v898_v11, 0.0 }
 0x205   : > { %v955_v14 = vmax.f32 %v893_v13, 0.0  ;;  %v1678_v15 = vpop.f32.mrb[42].mxu1 }
 0x206   : > { %v908_v17 = vadd.f32 %v1678_v15, %v2312_v1  ;;  %v902_v18 = vpop.f32.mrb[43].mxu1 }
 0x207   : > { %v903_v19 = vadd.f32 %v2312_v1, %v902_v18  ;;  %1753 = vmatprep.mubr.f32.mxu0 %v955_v14 }
 0x208   : > { %1754 = vmatmul.mubr.f32.gmra.mrb[40].mxu0 %v956_v16  ;;  %v958_v22 = vmax.f32 %v908_v17, 0.0 }
 0x209   : > { %v957_v20 = vmax.f32 %v903_v19, 0.0  ;;  %v1681_v21 = vpop.f32.mrb[44].mxu1 }
 0x20a   : > { %v918_v23 = vadd.f32 %v1681_v21, %v2312_v1  ;;  %v912_v24 = vpop.f32.mrb[45].mxu1 }
 0x20b   : > { %v913_v25 = vadd.f32 %v2312_v1, %v912_v24  ;;  %1756 = vmatprep.mubr.f32.mxu0 %v957_v20 }
 0x20c   : > { %1757 = vmatmul.mubr.f32.gmra.mrb[42].mxu0 %v958_v22  ;;  %v960_v29 = vmax.f32 %v918_v23, 0.0 }
 0x20d   : > { %v959_v26 = vmax.f32 %v913_v25, 0.0  ;;  %v1684_v27 = vpop.f32.mrb[46].mxu1 }
 0x20e   : > { %v928_v30 = vadd.f32 %v1684_v27, %v2312_v1  ;;  %v922_v31 = vpop.f32.mrb[47].mxu1 }
 0x20f   : > { %v923_v33 = vadd.f32 %v2312_v1, %v922_v31  ;;  %1759 = vmatprep.mubr.f32.mxu0 %v959_v26 }
 0x210   : > { %1760 = vmatmul.mubr.f32.gmra.mrb[44].mxu0 %v960_v29  ;;  %v962_v34 = vmax.f32 %v928_v30, 0.0 }
 0x211   : > { %v961_v35 = vmax.f32 %v923_v33, 0.0 }
 0x213   : > { %1762 = vmatprep.mubr.f32.mxu0 %v961_v35 }
 0x214   : > { %1763 = vmatmul.mubr.f32.gmra.mrb[46].mxu0 %v962_v34 }
 0x2ab   : > { %v1719_v37 = vpop.f32.mrb[16].mxu0 }
 0x2ac   : > { %v1058_v38 = vadd.f32 %v1719_v37, %v2350_v36  ;;  %v1052_v39 = vpop.f32.mrb[17].mxu0 }
 0x2ad   : > { %v1053_v1 = vadd.f32 %v2350_v36, %v1052_v39 }
 0x2ae   : > { %v1212_v41 = vmax.f32 %v1058_v38, 0.0 }
 0x2af   : > { %v1211_v42 = vmax.f32 %v1053_v1, 0.0  ;;  %v1722_v43 = vpop.f32.mrb[18].mxu0 }
 0x2b0   : > { %1244 = vst [vmem:[%s2356_s14 + $0x8] sm:$0xff] %v1212_v41  ;;  %v1068_v32 = vadd.f32 %v1722_v43, %v2350_v36  ;;  %v1062_v44 = vpop.f32.mrb[19].mxu0 }
 0x2b1   : > { %1243 = vst [vmem:[%s2356_s14] sm:$0xff] %v1211_v42  ;;  %v1063_v45 = vadd.f32 %v2350_v36, %v1062_v44 }
 0x2b2   : > { %v1214_v46 = vmax.f32 %v1068_v32, 0.0 }
 0x2b3   : > { %v1213_v40 = vmax.f32 %v1063_v45, 0.0  ;;  %v1725_v47 = vpop.f32.mrb[20].mxu0 }
 0x2b4   : > { %1246 = vst [vmem:[%s2356_s14 + $0x18] sm:$0xff] %v1214_v46  ;;  %v1078_v49 = vadd.f32 %v1725_v47, %v2350_v36  ;;  %v1072_v50 = vpop.f32.mrb[21].mxu0 }
 0x2b5   : > { %1245 = vst [vmem:[%s2356_s14 + $0x10] sm:$0xff] %v1213_v40  ;;  %v1073_v48 = vadd.f32 %v2350_v36, %v1072_v50 }
 0x2b6   : > { %v1216_v51 = vmax.f32 %v1078_v49, 0.0 }
 0x2b7   : > { %v1215_v52 = vmax.f32 %v1073_v48, 0.0  ;;  %v1728_v53 = vpop.f32.mrb[22].mxu0 }
 0x2b8   : > { %1248 = vst [vmem:[%s2356_s14 + $0x28] sm:$0xff] %v1216_v51  ;;  %v1088_v54 = vadd.f32 %v1728_v53, %v2350_v36  ;;  %v1082_v55 = vpop.f32.mrb[23].mxu0 }
 0x2b9   : > { %1247 = vst [vmem:[%s2356_s14 + $0x20] sm:$0xff] %v1215_v52  ;;  %v1083_v56 = vadd.f32 %v2350_v36, %v1082_v55 }
 0x2ba   : > { %v1218_v57 = vmax.f32 %v1088_v54, 0.0 }
 0x2bb   : > { %v1217_v58 = vmax.f32 %v1083_v56, 0.0  ;;  %v1731_v59 = vpop.f32.mrb[24].mxu0 }
 0x2bc   : > { %1250 = vst [vmem:[%s2356_s14 + $0x38] sm:$0xff] %v1218_v57  ;;  %v1098_v60 = vadd.f32 %v1731_v59, %v2350_v36  ;;  %v1092_v61 = vpop.f32.mrb[25].mxu0 }
 0x2bd   : > { %1249 = vst [vmem:[%s2356_s14 + $0x30] sm:$0xff] %v1217_v58  ;;  %v1093_v62 = vadd.f32 %v2350_v36, %v1092_v61 }
 0x2be   : > { %v1220_v63 = vmax.f32 %v1098_v60, 0.0 }
 0x2bf   : > { %v1219_v0 = vmax.f32 %v1093_v62, 0.0  ;;  %v1734_v28 = vpop.f32.mrb[26].mxu0 }
 0x2c0   : > { %1252 = vst [vmem:[%s2356_s14 + $0x48] sm:$0xff] %v1220_v63  ;;  %v1108_v2 = vadd.f32 %v1734_v28, %v2350_v36  ;;  %v1102_v3 = vpop.f32.mrb[27].mxu0 }
 0x2c1   : > { %1251 = vst [vmem:[%s2356_s14 + $0x40] sm:$0xff] %v1219_v0  ;;  %v1103_v4 = vadd.f32 %v2350_v36, %v1102_v3 }
 0x2c2   : > { %v1222_v5 = vmax.f32 %v1108_v2, 0.0 }
 0x2c3   : > { %v1221_v6 = vmax.f32 %v1103_v4, 0.0  ;;  %v1737_v7 = vpop.f32.mrb[28].mxu0 }
 0x2c4   : > { %1254 = vst [vmem:[%s2356_s14 + $0x58] sm:$0xff] %v1222_v5  ;;  %v1118_v8 = vadd.f32 %v1737_v7, %v2350_v36  ;;  %v1112_v9 = vpop.f32.mrb[29].mxu0 }
 0x2c5   : > { %1253 = vst [vmem:[%s2356_s14 + $0x50] sm:$0xff] %v1221_v6  ;;  %v1113_v10 = vadd.f32 %v2350_v36, %v1112_v9 }
 0x2c6   : > { %v1224_v11 = vmax.f32 %v1118_v8, 0.0 }
 0x2c7   : > { %v1223_v12 = vmax.f32 %v1113_v10, 0.0  ;;  %v1740_v13 = vpop.f32.mrb[30].mxu0 }
 0x2c8   : > { %1256 = vst [vmem:[%s2356_s14 + $0x68] sm:$0xff] %v1224_v11  ;;  %v1128_v14 = vadd.f32 %v1740_v13, %v2350_v36  ;;  %v1122_v15 = vpop.f32.mrb[31].mxu0 }
 0x2c9   : > { %1255 = vst [vmem:[%s2356_s14 + $0x60] sm:$0xff] %v1223_v12  ;;  %v1123_v16 = vadd.f32 %v2350_v36, %v1122_v15 }
 0x2ca   : > { %v1226_v17 = vmax.f32 %v1128_v14, 0.0 }
 0x2cb   : > { %v1225_v18 = vmax.f32 %v1123_v16, 0.0  ;;  %v1743_v19 = vpop.f32.mrb[32].mxu0 }
 0x2cc   : > { %1258 = vst [vmem:[%s2356_s14 + $0x78] sm:$0xff] %v1226_v17  ;;  %v1138_v20 = vadd.f32 %v1743_v19, %v2350_v36  ;;  %v1132_v21 = vpop.f32.mrb[33].mxu0 }
 0x2cd   : > { %1257 = vst [vmem:[%s2356_s14 + $0x70] sm:$0xff] %v1225_v18  ;;  %v1133_v22 = vadd.f32 %v2350_v36, %v1132_v21 }
 0x2ce   : > { %v1228_v23 = vmax.f32 %v1138_v20, 0.0 }
 0x2cf   : > { %v1227_v24 = vmax.f32 %v1133_v22, 0.0  ;;  %v1746_v25 = vpop.f32.mrb[34].mxu0 }
 0x2d0   : > { %1260 = vst [vmem:[%s2356_s14 + $0x88] sm:$0xff] %v1228_v23  ;;  %v1148_v26 = vadd.f32 %v1746_v25, %v2350_v36  ;;  %v1142_v27 = vpop.f32.mrb[35].mxu0 }
 0x2d1   : > { %1259 = vst [vmem:[%s2356_s14 + $0x80] sm:$0xff] %v1227_v24  ;;  %v1143_v29 = vadd.f32 %v2350_v36, %v1142_v27 }
 0x2d2   : > { %v1230_v30 = vmax.f32 %v1148_v26, 0.0 }
 0x2d3   : > { %v1229_v31 = vmax.f32 %v1143_v29, 0.0  ;;  %v1749_v33 = vpop.f32.mrb[36].mxu0 }
 0x2d4   : > { %1262 = vst [vmem:[%s2356_s14 + $0x98] sm:$0xff] %v1230_v30  ;;  %v1158_v35 = vadd.f32 %v1749_v33, %v2350_v36  ;;  %v1152_v34 = vpop.f32.mrb[37].mxu0 }
 0x2d5   : > { %1261 = vst [vmem:[%s2356_s14 + $0x90] sm:$0xff] %v1229_v31  ;;  %v1153_v37 = vadd.f32 %v2350_v36, %v1152_v34 }
 0x2d6   : > { %v1232_v38 = vmax.f32 %v1158_v35, 0.0 }
 0x2d7   : > { %v1231_v39 = vmax.f32 %v1153_v37, 0.0  ;;  %v1752_v1 = vpop.f32.mrb[38].mxu0 }
 0x2d8   : > { %1264 = vst [vmem:[%s2356_s14 + $0xa8] sm:$0xff] %v1232_v38  ;;  %v1168_v41 = vadd.f32 %v1752_v1, %v2350_v36  ;;  %v1162_v42 = vpop.f32.mrb[39].mxu0 }
 0x2d9   : > { %1263 = vst [vmem:[%s2356_s14 + $0xa0] sm:$0xff] %v1231_v39  ;;  %v1163_v43 = vadd.f32 %v2350_v36, %v1162_v42 }
 0x2da   : > { %v1234_v32 = vmax.f32 %v1168_v41, 0.0 }
 0x2db   : > { %v1233_v44 = vmax.f32 %v1163_v43, 0.0  ;;  %v1755_v45 = vpop.f32.mrb[40].mxu0 }
 0x2dc   : > { %1266 = vst [vmem:[%s2356_s14 + $0xb8] sm:$0xff] %v1234_v32  ;;  %v1178_v46 = vadd.f32 %v1755_v45, %v2350_v36  ;;  %v1172_v40 = vpop.f32.mrb[41].mxu0 }
 0x2dd   : > { %1265 = vst [vmem:[%s2356_s14 + $0xb0] sm:$0xff] %v1233_v44  ;;  %v1173_v47 = vadd.f32 %v2350_v36, %v1172_v40 }
 0x2de   : > { %v1236_v49 = vmax.f32 %v1178_v46, 0.0 }
 0x2df   : > { %v1235_v50 = vmax.f32 %v1173_v47, 0.0  ;;  %v1758_v48 = vpop.f32.mrb[42].mxu0 }
 0x2e0   : > { %1268 = vst [vmem:[%s2356_s14 + $0xc8] sm:$0xff] %v1236_v49  ;;  %v1188_v51 = vadd.f32 %v1758_v48, %v2350_v36  ;;  %v1182_v52 = vpop.f32.mrb[43].mxu0 }
 0x2e1   : > { %1267 = vst [vmem:[%s2356_s14 + $0xc0] sm:$0xff] %v1235_v50  ;;  %v1183_v53 = vadd.f32 %v2350_v36, %v1182_v52 }
 0x2e2   : > { %v1238_v54 = vmax.f32 %v1188_v51, 0.0 }
 0x2e3   : > { %v1237_v55 = vmax.f32 %v1183_v53, 0.0  ;;  %v1761_v56 = vpop.f32.mrb[44].mxu0 }
 0x2e4   : > { %1270 = vst [vmem:[%s2356_s14 + $0xd8] sm:$0xff] %v1238_v54  ;;  %v1198_v57 = vadd.f32 %v1761_v56, %v2350_v36  ;;  %v1192_v58 = vpop.f32.mrb[45].mxu0 }
 0x2e5   : > { %1269 = vst [vmem:[%s2356_s14 + $0xd0] sm:$0xff] %v1237_v55  ;;  %v1193_v59 = vadd.f32 %v2350_v36, %v1192_v58 }
 0x2e6   : > { %v1240_v60 = vmax.f32 %v1198_v57, 0.0 }
 0x2e7   : > { %v1239_v61 = vmax.f32 %v1193_v59, 0.0  ;;  %v1764_v62 = vpop.f32.mrb[46].mxu0 }
 0x2e8   : > { %1272 = vst [vmem:[%s2356_s14 + $0xe8] sm:$0xff] %v1240_v60  ;;  %v1208_v63 = vadd.f32 %v1764_v62, %v2350_v36  ;;  %v1202_v0 = vpop.f32.mrb[47].mxu0 }
 0x2e9   : > { %1271 = vst [vmem:[%s2356_s14 + $0xe0] sm:$0xff] %v1239_v61  ;;  %v1203_v28 = vadd.f32 %v2350_v36, %v1202_v0 }
 0x2ea   : > { %v1242_v2 = vmax.f32 %v1208_v63, 0.0 }
 0x2eb   : > { %v1241_v3 = vmax.f32 %v1203_v28, 0.0 }
 0x2ec   : > { %1274 = vst [vmem:[%s2356_s14 + $0xf8] sm:$0xff] %v1242_v2 }
 0x2ed   : > { %1273 = vst [vmem:[%s2356_s14 + $0xf0] sm:$0xff] %v1241_v3 }
 0x2ee   : > { %1913 = shalt.err (!%p1910_p3)
}
 0x2ef   : > { %s1914_s29 = scalar_lea.hbm %s2423_s18, 4096  ;;  %s1918_s13 = scalar_lea.hbm %s2479_s7, 16384 }
 0x2f0   : > { %p1915_p4 = scmp.ne.s32.totalorder %s2423_s18, %s1914_s29  ;;  %p1919_p9 = scmp.lt.u32.totalorder %s2423_s18, %s2479_s7 }
 0x2f1   : > { %p1920_p10 = scmp.lt.u32.totalorder %s1918_s13, %s1914_s29  ;;  %p1922_p12 = scmp.lt.u32.totalorder %s1914_s29, %s2423_s18 }
 0x2f2   : > { %p1916_p7 = pnand %p1915_p4, %p2045_p5 }
 0x2f3   : > { %p1921_p11 = por %p1920_p10, %p1919_p9 }
 0x2f4   : > { %p1917_p8 = pneg %p1916_p7 }
 0x2f5   : > { %p1923_p13 = por %p1922_p12, %p1921_p11 }
 0x2f7   : > { %p1924_p0 = pnand %p1923_p13, %p1917_p8 }
 0x2f9   : > { %1927 = shalt.err (!%p1924_p0)
}
 0x2fa   : > { %s1965_s17 = smov 128   ;;  %s1966_s20 = smov 8  }
 0x2fb   : > { %1859 = dma.vmem_to_hbm [thread:$0]  (%p2045_p5), %s2425_s16, 4096, %s2423_s18, %s2431_s28, %s1965_s17, %s1965_s17, %s1966_s20  }
 0x2fc PF: > { %p1865_p1 = scmp.ge.s32.totalorder %s1962_s27, 2  ;;  %s1304_s19 = sand.u32 1, %s1950_s24  }
 0x2fd   : > { %s1305_s21 = scalar_lea.sflag [#allocation3], %s1304_s19 }
 0x2fe   : > { %p1862_p2 = pnand %p1865_p1, %p2049_p6 }
 0x300   : > { %1945 = dma.done.wait (!%p1862_p2), %s1305_s21, 4096  }
 0x301   : > { %1947 = vsyncadd (!%p1862_p2), %s1305_s21, 4294963200  ;;  %p17_p3 = scmp.ge.s32.totalorder %s2032_s30, 6   ;;  %s2482_s24 = smov %s1954_s25 }
 0x302   : > { %s2483_s25 = smov %s1958_s26  ;;  %s2484_s26 = smov %s2043_s10 }
 0x303   : > { %s2485_s27 = smov %s2032_s30  ;;  %19 = sbr.rel (!%p17_p3) target bundleno = 3 (0x3), region = 83 }
 0x30a   :  { %1310 = vsyncpa [#allocation3], 1 }
 0x30b   :  { %1312 = vsyncpa [#allocation3 + $0x1], 1 }

</bundles_post_ra>
